<compile_context>
chip_gen: v7x
topology: tpu7x:2x2x1
jax: 0.10.0
libtpu: 0.0.40
codegen_flags: <defaults>
</compile_context>

<pallas_src>
import math
import functools

import jax
import jax.numpy as jnp
from jax.experimental import pallas as pl
from jax.experimental.pallas import tpu as pltpu


def _affine_kernel(x_ref, o_ref, *, mul: float, add: float):
    """Single fused elementwise affine: o = x * mul + add."""
    o_ref[...] = x_ref[...] * mul + add


def _lane_dense_view(batch: int, feat: int):
    """Pick a (rows, width) reinterpretation of the contiguous (B, D) buffer
    with width a multiple of 128 (lane-dense, unmasked stores).  Returns None
    if no such factorization exists."""
    n = batch * feat
    for w in (8192, 4096, 2048, 1024, 512, 256, 128):
        if n % w == 0:
            return n // w, w
    return None


def _pick_row_tile(rows: int, width: int, itemsize: int,
                   target_bytes: int = 2 << 20) -> int:
    """Rows per block: ~target_bytes per x tile, multiple of 8, full width."""
    r = max(1, target_bytes // max(1, width * itemsize))
    tb = max(8, (r // 8) * 8)
    if tb >= rows:
        return rows            # single block == full array dim (always legal)
    return tb                  # multiple of 8; partial last block is fine


def _affine_pallas_2d(x2, mul: float, add: float):
    """Run the tiled elementwise affine on a 2-D array."""
    R, W = x2.shape
    tb = _pick_row_tile(R, W, jnp.dtype(x2.dtype).itemsize)
    grid = (pl.cdiv(R, tb),)
    kernel = functools.partial(_affine_kernel, mul=mul, add=add)
    return pl.pallas_call(
        kernel,
        out_shape=jax.ShapeDtypeStruct((R, W), x2.dtype),
        grid=grid,
        in_specs=[pl.BlockSpec((tb, W), lambda i: (i, 0))],
        out_specs=pl.BlockSpec((tb, W), lambda i: (i, 0)),
        compiler_params=pltpu.CompilerParams(
            dimension_semantics=("parallel",)),
    )(x2)


def _affine_pallas(x, mul: float, add: float):
    """Elementwise affine on (B, D) x, using a lane-dense view when possible."""
    B, D = x.shape
    view = _lane_dense_view(B, D)
    if view is not None:
        R, W = view
        # Contiguous row-major reshape: zero-copy reinterpretation.
        out2 = _affine_pallas_2d(x.reshape(R, W), mul, add)
        return out2.reshape(B, D)
    # Fallback: tile over batch with the full feature dim (legal block shape).
    return _affine_pallas_2d(x, mul, add)


class AffineLinearMapping:
    """JAX/Pallas port of _AffineLinearMapping.

    reverse=True :  x = (x + lb/(hb-lb)) * (hb-lb)         (pdj, sldj unchanged)
    reverse=False:  x = x/(hb-lb) - lb/(hb-lb)
                    pdj  = pdj * 1/(hb-lb)**input_dim
                    sldj = sldj + (-log(hb-lb) * input_dim)
    """

    def __init__(self, input_dim: int, lb: float = -1.0, hb: float = 1.0,
                 min_pallas_elements: int = 0):
        self.input_dim = int(input_dim)
        self.lb = float(lb)
        self.hb = float(hb)
        # Problems with fewer than this many x elements skip Pallas entirely
        # (launch overhead dominates); 0 => always use the Pallas kernel.
        self.min_pallas_elements = int(min_pallas_elements)

    def _apply_affine(self, x, mul: float, add: float):
        B, D = x.shape
        if B * D < self.min_pallas_elements:
            return x * mul + add           # tiny-problem fallback (XLA fuses)
        return _affine_pallas(x, mul, add)

    @functools.partial(jax.jit, static_argnums=(0, 4))
    def __call__(self, x, pdj=None, sldj=None, reverse=True):
        B, D = x.shape
        assert D == self.input_dim
        scale = self.hb - self.lb

        if reverse:
            # (x + lb/scale) * scale  ==  x*scale + lb
            x_out = self._apply_affine(x, scale, self.lb)
            return x_out, pdj, sldj

        # reverse=False: x/scale - lb/scale  ==  x*(1/scale) + (-lb/scale)
        x_out = self._apply_affine(x, 1.0 / scale, -self.lb / scale)

        # pdj / sldj are O(batch) scalar updates: keep them in the wrapper
        # (plain jnp, XLA-fused) rather than as 1-lane kernel operands.
        # NOTE: scale**input_dim can under/overflow f32 for large input_dim
        # when scale != 1; the log-space sldj update is the robust carrier.
        pdj_out = None if pdj is None else (pdj * 1.0) / (scale ** self.input_dim)
        sldj_out = None if sldj is None else sldj + (-math.log(scale) * self.input_dim)
        return x_out, pdj_out, sldj_out


if __name__ == "__main__":
    key = jax.random.PRNGKey(0)
    kx, kp, ks = jax.random.split(key, 3)

    batch, input_dim = 8, 32
    lb, hb = -1.0, 1.0

    x = jax.random.uniform(kx, (batch, input_dim), jnp.float32,
                           minval=lb, maxval=hb)
    pdj = jax.random.uniform(kp, (batch,), jnp.float32, minval=0.5, maxval=1.5)
    sldj = jax.random.normal(ks, (batch,), jnp.float32)

    mapping = AffineLinearMapping(input_dim, lb=lb, hb=hb)

    # ---- reverse=True path (default) ----
    x_rev, pdj_rev, sldj_rev = mapping(x, pdj, sldj, True)
    jax.block_until_ready(x_rev)
    x_rev_ref = (x + lb / (hb - lb)) * (hb - lb)
    assert jnp.allclose(x_rev, x_rev_ref, atol=1e-6), "reverse path mismatch"
    assert jnp.allclose(pdj_rev, pdj) and jnp.allclose(sldj_rev, sldj)

    # ---- reverse=False path ----
    x_fwd, pdj_fwd, sldj_fwd = mapping(x, pdj, sldj, False)
    jax.block_until_ready((x_fwd, pdj_fwd, sldj_fwd))
    x_fwd_ref = x / (hb - lb) - lb / (hb - lb)
    pdj_ref = pdj * 1.0 / (hb - lb) ** input_dim
    sldj_ref = sldj + (-math.log(hb - lb) * input_dim)
    assert jnp.allclose(x_fwd, x_fwd_ref, atol=1e-6), "forward x mismatch"
    assert jnp.allclose(pdj_fwd, pdj_ref, atol=1e-6), "forward pdj mismatch"
    assert jnp.allclose(sldj_fwd, sldj_ref, atol=1e-6), "forward sldj mismatch"

    # ---- reverse=False with pdj/sldj omitted ----
    x_fwd2, pdj_none, sldj_none = mapping(x, None, None, False)
    jax.block_until_ready(x_fwd2)
    assert pdj_none is None and sldj_none is None
    assert jnp.allclose(x_fwd2, x_fwd_ref, atol=1e-6)

    # ---- odd feature width (no 128 factor) exercises the fallback tiling ----
    x_odd = jax.random.normal(kx, (16, 33), jnp.float32)
    m_odd = AffineLinearMapping(33, lb=lb, hb=hb)
    y_odd, _, _ = m_odd(x_odd, None, None, True)
    jax.block_until_ready(y_odd)
    assert jnp.allclose(y_odd, (x_odd + lb / (hb - lb)) * (hb - lb), atol=1e-6)

    print("KERNEL_OK")
</pallas_src>

<mosaic_0001>
module attributes {stable_mosaic.version = 11 : i64} {
  func.func @_affine_kernel(%arg0: i32, %arg1: memref<1x256xf32, #tpu.memory_space<vmem>>, %arg2: memref<1x256xf32, #tpu.memory_space<vmem>>) attributes {dimension_semantics = [#tpu.dimension_semantics<parallel>], iteration_bounds = array<i64: 1>, scalar_prefetch = 0 : i64, scratch_operands = 0 : i64, tpu.core_type = #tpu.core_type<tc>, window_params = [{transform_indices = @transform_0, window_bounds = array<i64: 1, 256>}, {transform_indices = @transform_1, window_bounds = array<i64: 1, 256>}]} {
    %c0 = arith.constant 0 : index
    %c0_0 = arith.constant 0 : index
    %0 = vector.load %arg1[%c0, %c0_0] : memref<1x256xf32, #tpu.memory_space<vmem>>, vector<1x256xf32>
    %cst = arith.constant 2.000000e+00 : f32
    %1 = vector.broadcast %cst : f32 to vector<1x256xf32>
    %2 = arith.mulf %0, %1 : vector<1x256xf32>
    %cst_1 = arith.constant -1.000000e+00 : f32
    %3 = vector.broadcast %cst_1 : f32 to vector<1x256xf32>
    %4 = arith.addf %2, %3 : vector<1x256xf32>
    %c0_2 = arith.constant 0 : index
    %c0_3 = arith.constant 0 : index
    %5 = vector.load %arg2[%c0_2, %c0_3] : memref<1x256xf32, #tpu.memory_space<vmem>>, vector<1x256xf32>
    tpu.vector_store %arg2[%c0_2, %c0_3], %4 {strides = array<i32>} : memref<1x256xf32, #tpu.memory_space<vmem>>, vector<1x256xf32>,
    return
  }
  func.func @transform_0(%arg0: i32) -> (i32, i32) {
    %c0_i32 = arith.constant 0 : i32
    %c0_i32_0 = arith.constant 0 : i32
    return %arg0, %c0_i32 : i32, i32
  }
  func.func @transform_1(%arg0: i32) -> (i32, i32) {
    %c0_i32 = arith.constant 0 : i32
    %c0_i32_0 = arith.constant 0 : i32
    return %arg0, %c0_i32 : i32, i32
  }
}

</mosaic_0001>

<bundles_post_ra>
// kernel: a_call__.1
= control target key start
LH: loop header
LB: loop body
LE: loop exit
PB: predicated region body
PF: predicated region fallthrough
CT: control target
= control target key end

     0   :  { %v11_v0 = vlaneseq  ;;  %s36_s0 = inlined_call_operand.vmem [shape: f32[1,256], index: 0, kind: input, shape index: {}]   ;;  %s37_s1 = inlined_call_operand.vmem [shape: f32[1,256], index: 1, kind: output, shape index: {}]  }
   0x1   :  { %v8_v1 = vld [vmem:[%s36_s0] sm:$0x3] }
   0x2   :  { %v9_v2 = vmul.f32 2.0, %v8_v1  ;;  %vm13_vm0 = vcmp.lt.s32.totalorder %v11_v0, 256 }
   0x4   :  { %v10_v3 = vadd.f32 -1.0, %v9_v2 }
   0x6   :  { %15 = vst.msk [vmem:[%s37_s1] sm:$0x3] %vm13_vm0, %v10_v3 }

</bundles_post_ra>
